<compile_context>
chip_gen: v5e
topology: v5e:2x2
jax: 0.10.0
libtpu: 0.0.40
codegen_flags: <defaults>
</compile_context>

<pallas_src>
import functools
import math

import jax
import jax.numpy as jnp
from jax import lax
from jax.experimental import pallas as pl
from jax.experimental.pallas import tpu as pltpu


_SUBLANE = 8
_DEFAULT_VMEM_CAPACITY = 64 * 1024 * 1024   # v7x per-TC physical (fleet minimum)
_VMEM_LIMIT_CAP = 64 * 1024 * 1024          # never ask for more than this scoped VMEM


@functools.lru_cache(maxsize=1)
def _vmem_limit_bytes():
    """Scoped-VMEM limit to request: ~70% of physical VMEM, capped at 64 MiB.

    v5e/v6e (128 MiB physical) -> 64 MiB; v7x (64 MiB physical) -> ~45 MiB.
    """
    try:
        cap = int(pltpu.get_tpu_info().vmem_capacity_bytes)
    except Exception:  # query unavailable (e.g. AOT/CPU tracing) -> safe minimum
        cap = _DEFAULT_VMEM_CAPACITY
    return min(int(cap * 0.7), _VMEM_LIMIT_CAP)


def _round_up(v, m):
    return ((v + m - 1) // m) * m


def _derive_tile_rows(rows, d, itemsize, vmem_limit):
    """Pick the row-tile size from the VMEM byte budget and a min step count."""
    # Per-row VMEM footprint of one pipelined grid step:
    #   2x input tile + 2x output tile (double-buffered, in x.dtype)
    #   + ~2x tile worth of f32 temporaries inside the kernel (upcast x,
    #     centered / normalized values; the compiler reuses some of these).
    per_row = 4 * d * itemsize + 2 * d * 4
    budget = int(vmem_limit * 0.75)            # headroom for gamma/beta + misc
    cap_rows = max(_SUBLANE, budget // per_row)
    cap_rows = max(_SUBLANE, (cap_rows // _SUBLANE) * _SUBLANE)
    # NOTE: for enormous D even the minimum 8-row tile may not fit; there is no
    # chunked-D fallback (compile-time OOM rather than silent slowdown).

    if rows <= _SUBLANE:
        return rows                            # single full-extent block

    # Never emit a single-step grid for non-trivial row counts: >=2 steps keeps
    # DMA-in / compute / DMA-out overlapped (double buffering), and >=8 steps
    # lets both v7x TensorCores get several blocks each under "parallel"
    # semantics. Small problems may end up with a few more (tiny) steps; the
    # per-step overhead is negligible at those sizes.
    target_steps = min(8, pl.cdiv(rows, _SUBLANE))
    tr = min(cap_rows, pl.cdiv(rows, target_steps))
    tr = max(_SUBLANE, _round_up(tr, _SUBLANE))
    tr = min(tr, cap_rows)
    return min(tr, rows)


def _layernorm_kernel(x_ref, g_ref, b_ref, o_ref, *, eps):
    # x_ref/o_ref: (tile_rows, D) VMEM tiles; g_ref/b_ref: (1, D).
    # LayerNorm over the last (lane) axis, f32 internal compute.
    # Kept deliberately simple: the kernel is HBM-bandwidth bound, so the
    # VALU/XLU/EUP slots have slack and micro-fusions would not move wall-clock.
    x = x_ref[...].astype(jnp.float32)
    mean = jnp.mean(x, axis=-1, keepdims=True)            # XLU reduce
    xc = x - mean
    var = jnp.mean(xc * xc, axis=-1, keepdims=True)       # XLU reduce (biased var)
    inv = lax.rsqrt(var + eps)                            # EUP
    y = xc * inv
    y = y * g_ref[...].astype(jnp.float32) + b_ref[...].astype(jnp.float32)
    o_ref[...] = y.astype(o_ref.dtype)


@functools.partial(jax.jit, static_argnames=("eps", "tile_rows"))
def quant_layer_norm(x, gamma, beta, *, eps=1e-5, tile_rows=None):
    """QuantLayerNorm.forward with use_input_quant=False (module default).

    LayerNorm over the last axis (PyTorch nn.LayerNorm semantics), computed in
    a Pallas TPU kernel. `tile_rows` is auto-derived from D, x.dtype and the
    per-generation VMEM budget unless explicitly overridden (mainly testing).
    """
    # TODO(synk): SymmetricQuantizer (the use_input_quant=True path) is not
    # defined in the reference source; the module default skips it, so only
    # the LayerNorm hot path is implemented here.
    # TODO(synk): for D < 128 (e.g. the demo D=32) only D/128 of the lanes are
    # live and stores are masked; a lane-packed path (fold 128//D rows into the
    # lane axis with segmented reductions) would help if such shapes are hot.
    orig_shape = x.shape
    d = orig_shape[-1]
    rows = math.prod(orig_shape[:-1]) if len(orig_shape) > 1 else 1
    x2 = x.reshape(rows, d)
    g2 = gamma.reshape(1, d)
    b2 = beta.reshape(1, d)

    vmem_limit = _vmem_limit_bytes()
    itemsize = jnp.dtype(x.dtype).itemsize

    if tile_rows is None:
        tile_rows = _derive_tile_rows(rows, d, itemsize, vmem_limit)
    else:
        # Keep user-supplied tile sizes legal w.r.t. the (8,128) rule.
        tile_rows = int(tile_rows)
        if tile_rows >= rows:
            tile_rows = rows                   # full-extent block
        else:
            tile_rows = max(_SUBLANE, _round_up(tile_rows, _SUBLANE))
            tile_rows = min(tile_rows, rows)

    grid = (pl.cdiv(rows, tile_rows),)

    out2 = pl.pallas_call(
        functools.partial(_layernorm_kernel, eps=float(eps)),
        out_shape=jax.ShapeDtypeStruct((rows, d), x.dtype),
        grid_spec=pltpu.PrefetchScalarGridSpec(
            num_scalar_prefetch=0,
            grid=grid,
            in_specs=[
                pl.BlockSpec((tile_rows, d), lambda i: (i, 0)),
                pl.BlockSpec((1, d), lambda i: (0, 0)),
                pl.BlockSpec((1, d), lambda i: (0, 0)),
            ],
            out_specs=pl.BlockSpec((tile_rows, d), lambda i: (i, 0)),
        ),
        compiler_params=pltpu.CompilerParams(
            dimension_semantics=("parallel",),
            vmem_limit_bytes=vmem_limit,
        ),
    )(x2, g2, b2)

    return out2.reshape(orig_shape)


def _ref_layernorm(x, gamma, beta, eps):
    xf = x.astype(jnp.float32)
    mean = jnp.mean(xf, axis=-1, keepdims=True)
    var = jnp.mean((xf - mean) ** 2, axis=-1, keepdims=True)
    return ((xf - mean) / jnp.sqrt(var + eps) * gamma + beta).astype(x.dtype)


if __name__ == "__main__":
    key = jax.random.PRNGKey(0)
    k1, k2, k3, k4 = jax.random.split(key, 4)

    # Transformer-activation-like small shape: [batch=2, heads=4, seq=8, hidden=32]
    eps = 1e-5
    x = jax.random.normal(k1, (2, 4, 8, 32), dtype=jnp.float32)
    gamma = jax.random.normal(k2, (32,), dtype=jnp.float32)
    beta = jax.random.normal(k3, (32,), dtype=jnp.float32)

    out = quant_layer_norm(x, gamma, beta, eps=eps)
    out = jax.block_until_ready(out)

    ref = _ref_layernorm(x, gamma, beta, eps)
    assert out.shape == x.shape and out.dtype == x.dtype
    assert jnp.allclose(out, ref, atol=1e-4, rtol=1e-4)

    # Partial-last-block path (cdiv grid, masked writes) + user tile override.
    x_odd = jax.random.normal(k4, (5, 4, 32), dtype=jnp.float32)
    out_odd = jax.block_until_ready(
        quant_layer_norm(x_odd, gamma, beta, eps=eps, tile_rows=8)
    )
    ref_odd = _ref_layernorm(x_odd, gamma, beta, eps)
    assert jnp.allclose(out_odd, ref_odd, atol=1e-4, rtol=1e-4)

    # bf16 path (exercises dtype-aware tiling + f32 internal compute).
    x_bf16 = x.astype(jnp.bfloat16)
    out_bf16 = jax.block_until_ready(quant_layer_norm(x_bf16, gamma, beta, eps=eps))
    ref_bf16 = _ref_layernorm(x_bf16, gamma, beta, eps)
    assert out_bf16.dtype == jnp.bfloat16
    assert jnp.allclose(out_bf16.astype(jnp.float32),
                        ref_bf16.astype(jnp.float32), atol=5e-2, rtol=5e-2)

    print("KERNEL_OK")
</pallas_src>

<mosaic_0001>
module attributes {stable_mosaic.version = 11 : i64} {
  func.func @_layernorm_kernel(%arg0: i32, %arg1: memref<8x32xf32, #tpu.memory_space<vmem>>, %arg2: memref<1x32xf32, #tpu.memory_space<vmem>>, %arg3: memref<1x32xf32, #tpu.memory_space<vmem>>, %arg4: memref<8x32xf32, #tpu.memory_space<vmem>>) attributes {dimension_semantics = [#tpu.dimension_semantics<parallel>], iteration_bounds = array<i64: 8>, scalar_prefetch = 0 : i64, scratch_operands = 0 : i64, tpu.core_type = #tpu.core_type<tc>, window_params = [{transform_indices = @transform_0, window_bounds = array<i64: 8, 32>}, {pipeline_mode = #tpu.pipeline_mode<synchronous>, transform_indices = @transform_1, window_bounds = array<i64: 1, 32>}, {pipeline_mode = #tpu.pipeline_mode<synchronous>, transform_indices = @transform_2, window_bounds = array<i64: 1, 32>}, {transform_indices = @transform_3, window_bounds = array<i64: 8, 32>}]} {
    %c0 = arith.constant 0 : index
    %c0_0 = arith.constant 0 : index
    %0 = vector.load %arg1[%c0, %c0_0] : memref<8x32xf32, #tpu.memory_space<vmem>>, vector<8x32xf32>
    %cst = arith.constant dense<0.000000e+00> : vector<8xf32>
    %1 = vector.multi_reduction <add>, %0, %cst [1] : vector<8x32xf32> to vector<8xf32>
    %2 = vector.shape_cast %1 : vector<8xf32> to vector<8x1xf32>
    %cst_1 = arith.constant 3.200000e+01 : f32
    %3 = vector.broadcast %cst_1 : f32 to vector<8x1xf32>
    %4 = arith.divf %2, %3 : vector<8x1xf32>
    %5 = vector.broadcast %4 : vector<8x1xf32> to vector<8x32xf32>
    %6 = arith.subf %0, %5 : vector<8x32xf32>
    %7 = arith.mulf %6, %6 : vector<8x32xf32>
    %cst_2 = arith.constant dense<0.000000e+00> : vector<8xf32>
    %8 = vector.multi_reduction <add>, %7, %cst_2 [1] : vector<8x32xf32> to vector<8xf32>
    %9 = vector.shape_cast %8 : vector<8xf32> to vector<8x1xf32>
    %cst_3 = arith.constant 3.200000e+01 : f32
    %10 = vector.broadcast %cst_3 : f32 to vector<8x1xf32>
    %11 = arith.divf %9, %10 : vector<8x1xf32>
    %cst_4 = arith.constant 9.99999974E-6 : f32
    %12 = vector.broadcast %cst_4 : f32 to vector<8x1xf32>
    %13 = arith.addf %11, %12 : vector<8x1xf32>
    %14 = math.rsqrt %13 : vector<8x1xf32>
    %15 = vector.broadcast %14 : vector<8x1xf32> to vector<8x32xf32>
    %16 = arith.mulf %6, %15 : vector<8x32xf32>
    %c0_5 = arith.constant 0 : index
    %c0_6 = arith.constant 0 : index
    %17 = vector.load %arg2[%c0_5, %c0_6] : memref<1x32xf32, #tpu.memory_space<vmem>>, vector<1x32xf32>
    %18 = vector.broadcast %17 : vector<1x32xf32> to vector<8x32xf32>
    %19 = arith.mulf %16, %18 : vector<8x32xf32>
    %c0_7 = arith.constant 0 : index
    %c0_8 = arith.constant 0 : index
    %20 = vector.load %arg3[%c0_7, %c0_8] : memref<1x32xf32, #tpu.memory_space<vmem>>, vector<1x32xf32>
    %21 = vector.broadcast %20 : vector<1x32xf32> to vector<8x32xf32>
    %22 = arith.addf %19, %21 : vector<8x32xf32>
    %c0_9 = arith.constant 0 : index
    %c0_10 = arith.constant 0 : index
    %23 = vector.load %arg4[%c0_9, %c0_10] : memref<8x32xf32, #tpu.memory_space<vmem>>, vector<8x32xf32>
    tpu.vector_store %arg4[%c0_9, %c0_10], %22 {strides = array<i32>} : memref<8x32xf32, #tpu.memory_space<vmem>>, vector<8x32xf32>,
    return
  }
  func.func @transform_0(%arg0: i32) -> (i32, i32) {
    %c0_i32 = arith.constant 0 : i32
    %c0_i32_0 = arith.constant 0 : i32
    return %arg0, %c0_i32 : i32, i32
  }
  func.func @transform_1(%arg0: i32) -> (i32, i32) {
    %c0_i32 = arith.constant 0 : i32
    %c0_i32_0 = arith.constant 0 : i32
    %c0_i32_1 = arith.constant 0 : i32
    return %c0_i32, %c0_i32_0 : i32, i32
  }
  func.func @transform_2(%arg0: i32) -> (i32, i32) {
    %c0_i32 = arith.constant 0 : i32
    %c0_i32_0 = arith.constant 0 : i32
    %c0_i32_1 = arith.constant 0 : i32
    return %c0_i32, %c0_i32_0 : i32, i32
  }
  func.func @transform_3(%arg0: i32) -> (i32, i32) {
    %c0_i32 = arith.constant 0 : i32
    %c0_i32_0 = arith.constant 0 : i32
    return %arg0, %c0_i32 : i32, i32
  }
}

</mosaic_0001>

<bundles_post_ra>
// kernel: quant_layer_norm.1
= control target key start
LH: loop header
LB: loop body
LE: loop exit
PB: predicated region body
PF: predicated region fallthrough
CT: control target
= control target key end

     0   :  { %8 = vsyncpa [#allocation3], 0  ;;  %s638_s0 = inlined_call_operand.hbm [shape: f32[64,32], index: 0, kind: input, shape index: {}]   ;;  %s639_s1 = inlined_call_operand.vmem [shape: f32[1,32], index: 1, kind: input, shape index: {}]   ;;  %s640_s2 = inlined_call_operand.vmem [shape: f32[1,32], index: 2, kind: input, shape index: {}]   ;;  %s641_s3 = inlined_call_operand.hbm [shape: f32[64,32], index: 3, kind: output, shape index: {}]  }
   0x1   :  { %10 = vsyncpa [#allocation3 + $0x1], 0 }
   0x2   :  { %11 = vsyncpa [#allocation4], 0 }
   0x3   :  { %13 = vsyncpa [#allocation4 + $0x1], 0  ;;  %s500_s12 = smov 0   ;;  %s502_s13 = smov 0  }
   0x4   :  { %s504_s14 = smov 0   ;;  %s506_s15 = smov 0  }
   0x5 LB: > { %s521_s16 = sadd.s32 4294967295, %s477_s15   ;;  %s316_s17 = sadd.s32 4294967294, %s477_s15   ;;  %s477_s15 = sphi %s506_s15, %s650_s15   ;;  %s473_s14 = sphi %s504_s14, %s649_s14   ;;  %s469_s13 = sphi %s502_s13, %s648_s13   ;;  %s465_s12 = sphi %s500_s12, %s647_s12  }
   0x6   : > { %s525_s18 = sadd.s32 1, %s477_s15   ;;  %s26_s19 = sadd.s32 1, %s473_s14 }
   0x7   : > { %s23_s20 = ssub.s32 %s477_s15, %s525_s18  ;;  %p33_p0 = scmp.ne.s32.totalorder %s473_s14, %s469_s13 }
   0x8   : > { %p24_p1 = scmp.eq.s32.totalorder %s23_s20, 0  ;;  %p34_p2 = scmp.eq.s32.totalorder %s477_s15, 0 }
   0x9   : > { %p39_p3 = scmp.ne.s32.totalorder %s469_s13, %s465_s12  ;;  %p40_p4 = scmp.eq.s32.totalorder %s521_s16, 0 }
   0xa   : > { %s537_s21 = scalar_select %p24_p1, %s473_s14, %s26_s19  }
   0xb   : > { %p539_p5 = por %p34_p2, %p33_p0  ;;  %p543_p6 = por %p40_p4, %p39_p3 }
   0xc   : > { %p105_p7 = scmp.eq.s32.totalorder %s521_s16, 7  ;;  %p111_p8 = scmp.eq.s32.totalorder %s316_s17, 7 }
   0xd   : > { %p340_p9 = scmp.lt.s32.totalorder %s477_s15, 8  ;;  %s137_s26 = sand.u32 1, %s473_s14  }
   0xe   : > { %p549_p10 = por %p105_p7, %p33_p0  ;;  %p553_p11 = por %p111_p8, %p39_p3 }
   0xf   : > { %s320_s27 = sshll.u32 %s477_s15, 3  ;;  %s319_s28 = sshll.u32 %s137_s26, 3 }
  0x10   : > { %s145_s4 = scalar_lea.hbm %s638_s0, %s320_s27  ;;  %s141_s6 = scalar_lea.vmem [#allocation2], %s319_s28 }
  0x11   : > { %s147_s5 = sshll.u32 %s145_s4, 4  ;;  %s149_s7 = sshll.u32 %s141_s6, 4  ;;  %s148_s5 = int_to_ptr.hbm [resolvable:$true] %s147_s5  ;;  %s150_s7 = int_to_ptr.vmem [resolvable:$true] %s149_s7 }
  0x12   : > { %p564_p12 = pnand %p340_p9, %p539_p5  ;;  %p321_p13 = scmp.ge.s32.totalorder %s477_s15, 1 }
  0x13   : > { %p154_p0 = scmp.lt.s32.totalorder %s477_s15, 9  ;;  %s138_s9 = scalar_lea.sflag [#allocation3], %s137_s26 }
  0x14   : > { %s381_s10 = sshra.s32 %s148_s5, 4  ;;  %p385_p2 = pneg %p564_p12  ;;  %s382_s10 = int_to_ptr.hbm [resolvable:$true] %s381_s10 }
  0x15   : > { %s383_s11 = scalar_lea.hbm %s382_s10, 8  ;;  %s388_s20 = scalar_lea.hbm %s638_s0, 64 }
  0x16   : > { %p384_p1 = scmp.ne.s32.totalorder %s382_s10, %s383_s11  ;;  %p389_p5 = scmp.lt.s32.totalorder %s382_s10, %s638_s0 }
  0x17   : > { %p390_p7 = scmp.lt.s32.totalorder %s388_s20, %s383_s11 }
  0x18   : > { %p386_p3 = pnand %p385_p2, %p384_p1 }
  0x19   : > { %p391_p8 = por %p390_p7, %p389_p5 }
  0x1a   : > { %p387_p4 = pneg %p386_p3 }
  0x1c   : > { %p392_p9 = pnand %p391_p8, %p387_p4 }
  0x1e   : > { %395 = shalt.err (!%p392_p9)
}
  0x1f   : > { %335 = dma.hbm_to_vmem [thread:$0]  (!%p564_p12), %s148_s5, 128, %s150_s7, %s138_s9  }
  0x20   : > { %p155_p1 = pnand %p321_p13, %p154_p0 }
  0x21   : > { %s585_s26 = sand.u32 (!%p155_p1), 1, %s469_s13  }
  0x22   : > { %158 = sbr.rel (%p155_p1) target bundleno = 312 (0x138), region = 32  ;;  %s322_s28 = sshll.u32 (!%p155_p1), %s585_s26, 3 }
  0x23   : > { %s161_s29 = scalar_lea.sflag (!%p155_p1), [#allocation3], %s585_s26  ;;  %s164_s30 = scalar_lea.vmem (!%p155_p1), [#allocation2], %s322_s28 }
  0x27   : > { %456 = dma.done.wait (%p543_p6), %s161_s29, 128  }
  0x28   : > { %458 = vsyncadd (%p543_p6), %s161_s29, 4294967168  ;;  %vm189_vm0 = vcmask 261120   ;;  %v188_v0 = vld [vmem:[%s164_s30] sm:$0xff]  ;;  %v479_v2 = vmov 32.0   ;;  %s325_s23 = sshll.u32 %s521_s16, 3  ;;  %s187_s16 = scalar_lea.vmem [#allocation5], %s322_s28 }
  0x29   : > { %v190_v1 = vsel %vm189_vm0, %v188_v0, 0.0  ;;  %377 = vrcp.f32 %v479_v2  ;;  %v375_v23 = vld [vmem:[%s639_s1] ss:$0 sm:$0xff]  ;;  %s241_s8 = scalar_lea.hbm %s641_s3, %s325_s23  ;;  %s243_s11 = sshll.u32 %s187_s16, 4  ;;  %s244_s11 = int_to_ptr.vmem [resolvable:$true] %s243_s11 }
  0x2a   : > { %191 = vadd.xlane.f32.xlu0 %v190_v1  ;;  %v376_v26 = vld [vmem:[%s640_s2] ss:$0 sm:$0xff]  ;;  %s245_s17 = sshll.u32 %s241_s8, 4  ;;  %s231_s19 = scalar_lea.sflag [#allocation4], %s585_s26  ;;  %s246_s17 = int_to_ptr.hbm [resolvable:$true] %s245_s17 }
  0x2b   : > { %s425_s20 = sshra.s32 %s246_s17, 4  ;;  %s431_s28 = scalar_lea.hbm %s641_s3, 64  ;;  %s426_s20 = int_to_ptr.hbm [resolvable:$true] %s425_s20 }
  0x2c   : > { %s427_s22 = scalar_lea.hbm %s426_s20, 8  ;;  %p432_p0 = scmp.lt.s32.totalorder %s426_s20, %s641_s3 }
  0x2d   : > { %p428_p6 = scmp.ne.s32.totalorder %s426_s20, %s427_s22  ;;  %p433_p2 = scmp.lt.s32.totalorder %s431_s28, %s427_s22 }
  0x2f   : > { %v378_v3 = vpop.eup %377  ;;  %p429_p12 = pnand %p428_p6, %p549_p10  ;;  %p434_p3 = por %p433_p2, %p432_p0 }
  0x30   : > { %v194_v4 = vmul.f32 32.0, %v378_v3  ;;  %vm198_vm1 = vweird.f32 %v378_v3 }
  0x31   : > { %p430_p13 = pneg %p429_p12 }
  0x32   : > { %v195_v5 = vsub.f32 1.0, %v194_v4 }
  0x33   : > { %p435_p4 = pnand %p434_p3, %p430_p13 }
  0x34   : > { %v196_v6 = vmul.f32 %v378_v3, %v195_v5 }
  0x36   : > { %v197_v7 = vadd.f32 %v378_v3, %v196_v6 }
  0x38   : > { %v199_v8 = vsel %vm198_vm1, %v378_v3, %v197_v7 }
  0x9d   : > { %v192_v9 = vpop.xlane.xlu0 %191 }
  0x9e   : > { %v200_v10 = vmul.f32 %v199_v8, %v192_v9 }
  0xa0   : > { %v201_v11 = vsub.f32 %v188_v0, %v200_v10 }
  0xa2   : > { %v202_v12 = vmul.f32 %v201_v11, %v201_v11 }
  0xa4   : > { %v203_v13 = vsel %vm189_vm0, %v202_v12, 0.0 }
  0xa5   : > { %204 = vadd.xlane.f32.xlu0 %v203_v13 }
 0x118   : > { %v205_v14 = vpop.xlane.xlu0 %204 }
 0x119   : > { %v206_v15 = vmul.f32 %v205_v14, %v199_v8 }
 0x11b   : > { %v207_v16 = vadd.f32 1e-05, %v206_v15 }
 0x11d   : > { %379 = vrsqrt.f32 %v207_v16  ;;  %vm214_vm3 = vweird.f32 %v207_v16 }
 0x123   : > { %v380_v17 = vpop.eup %379 }
 0x124   : > { %v209_v18 = vmul.f32 %v380_v17, %v207_v16  ;;  %vm215_vm2 = vweird.f32 %v380_v17 }
 0x125   : > { %vm216_vm4 = vmor %vm214_vm3, %vm215_vm2 }
 0x126   : > { %v210_v19 = vmul.f32 %v380_v17, %v209_v18 }
 0x128   : > { %v211_v20 = vmul.f32 0.5, %v210_v19 }
 0x12a   : > { %v212_v21 = vsub.f32 1.5, %v211_v20 }
 0x12c   : > { %v213_v22 = vmul.f32 %v380_v17, %v212_v21 }
 0x12e   : > { %v217_v24 = vsel %vm216_vm4, %v380_v17, %v213_v22 }
 0x12f   : > { %v218_v25 = vmul.f32 %v217_v24, %v201_v11 }
 0x131   : > { %v223_v27 = vmul.f32 %v375_v23, %v218_v25 }
 0x133   : > { %v228_v28 = vadd.f32 %v376_v26, %v223_v27 }
 0x135   : > { %229 = vst.msk [vmem:[%s187_s16] sm:$0xff] %vm189_vm0, %v228_v28 }
 0x136   : > { %438 = shalt.err (!%p435_p4)
}
 0x137   : > { %330 = dma.vmem_to_hbm [thread:$0]  (%p549_p10), %s244_s11, 128, %s246_s17, %s231_s19  }
 0x138 PF: > { %p341_p5 = scmp.ge.s32.totalorder %s477_s15, 2  ;;  %s257_s26 = sand.u32 1, %s465_s12  }
 0x139   : > { %s258_s4 = scalar_lea.sflag [#allocation4], %s257_s26 }
 0x13a   : > { %p337_p7 = pnand %p341_p5, %p553_p11 }
 0x13c   : > { %p338_p8 = pneg %p337_p7 }
 0x13e   : > { %460 = dma.done.wait (%p338_p8), %s258_s4, 128  }
 0x13f   : > { %462 = vsyncadd (%p338_p8), %s258_s4, 4294967168  ;;  %p16_p9 = scmp.ge.s32.totalorder %s525_s18, 10   ;;  %s647_s12 = smov %s469_s13 }
 0x140   : > { %s648_s13 = smov %s473_s14  ;;  %s649_s14 = smov %s537_s21 }
 0x141   : > { %s650_s15 = smov %s525_s18  ;;  %18 = sbr.rel (!%p16_p9) target bundleno = 5 (0x5), region = 77 }
 0x146   :  { %264 = vsyncpa [#allocation3], 1 }
 0x147   :  { %266 = vsyncpa [#allocation3 + $0x1], 1 }
 0x148   :  { %267 = vsyncpa [#allocation4], 1 }
 0x149   :  { %269 = vsyncpa [#allocation4 + $0x1], 1 }

</bundles_post_ra>
